<compile_context>
chip_gen: v7x
topology: tpu7x:2x2x1
jax: 0.10.0
libtpu: 0.0.40
codegen_flags: <defaults>
</compile_context>

<pallas_src>
import jax
import jax.numpy as jnp
from jax import lax
from jax.experimental import pallas as pl
from jax.experimental.pallas import tpu as pltpu

# ----------------------------------------------------------------------------
# Synthetic CONFIG (the original pulls these from a global CONFIG dict).
# ----------------------------------------------------------------------------
CONFIG = dict(
    ENV_DIM=16,
    ARG_NUM=3,
    ARG_DEPTH=4,          # arg_dim = 12
    PRO_EMBED_DIM=16,
    PRO_NUM=8,
    PRO_KEY_DIM=8,        # pro_key is a parameter but unused in forward
)

ENV_DIM = CONFIG["ENV_DIM"]
ARG_DIM = CONFIG["ARG_NUM"] * CONFIG["ARG_DEPTH"]
PRO_NUM = CONFIG["PRO_NUM"]
PRO_EMBED_DIM = CONFIG["PRO_EMBED_DIM"]

HIDDEN_DIM = 32
STATE_DIM = 16
BATCH = 2


def _rup(x, m):
    return (x + m - 1) // m * m


# ---- packed activation lanes (layer-1 LHS) ---------------------------------
ARG_LANE = ENV_DIM                      # 16 : arg_in occupies lanes 16:28
B1_LANE = ENV_DIM + ARG_DIM             # 28 : constant 1.0 -> b1 folded into dot 1
IN_LANES = _rup(B1_LANE + 1, 8)         # 32 : = w1 block contraction rows

# ---- fused layer-3 RHS block ([w3 ; emb ; b3], lane-dense 128 wide) ---------
STATE_LANE = 0                          # state_ft in output lanes 0:16
EMB_LANE = STATE_DIM                    # 16 : pro_id_embed in output lanes 16:32
EMB_ROW = _rup(HIDDEN_DIM, 8)           # 32 : embedding-table rows of the block
B3_ROW = _rup(EMB_ROW + PRO_NUM, 8)     # 40 : b3 row (hit by the constant-1 lane)
P3_ROWS = _rup(B3_ROW + 1, 8)           # 48 : layer-2 output width == dot-3 contraction
OUT_LANES = 128                         # lane-dense output slab

# ---- single parameter slab (SLAB_ROWS, 128), all sub-block starts 8-aligned -
W1_OFF = P3_ROWS                        # 48 : w1 block rows 48:80 (lanes 0:32)
W2_OFF = W1_OFF + IN_LANES              # 80 : w2 block rows 80:112 (lanes 0:32)
B2_OFF = W2_OFF + HIDDEN_DIM            # 112: b2 row (lanes 0:32)
SLAB_ROWS = _rup(B2_OFF + 1, 8)         # 120


# ----------------------------------------------------------------------------
# Fused Pallas kernel: 3 chained MXU dots, one lane-dense store.
# ----------------------------------------------------------------------------
def _maze_core_kernel(x_ref, prg_ref, p_ref, o_ref):
    bt = x_ref.shape[0]

    x = x_ref[...]                                           # (bt, 32) f32
    prg = prg_ref[...]                                       # (bt, 1)  int32

    # Static sub-windows of the VMEM-resident parameter slab.
    w1 = p_ref[W1_OFF:W1_OFF + IN_LANES, 0:HIDDEN_DIM]       # (32, 32) incl. b1 row
    w2 = p_ref[W2_OFF:W2_OFF + HIDDEN_DIM, 0:P3_ROWS]        # (32, 48) lanes 32:48 = 0
    b2 = p_ref[B2_OFF:B2_OFF + 1, 0:P3_ROWS]                 # (1, 48)  lanes 32:48 = 0
    p3 = p_ref[0:P3_ROWS, :]                                 # (48, 128) [w3 ; emb ; b3]

    # ---- encoder: dot1 (b1 fused via the constant-1 input lane) + ReLU ------
    h = jnp.maximum(jnp.dot(x, w1, preferred_element_type=jnp.float32), 0.0)
    # ---- dot2 + b2 + ReLU; output already P3_ROWS wide (extra lanes stay 0) -
    h = jnp.maximum(jnp.dot(h, w2, preferred_element_type=jnp.float32) + b2, 0.0)

    # ---- homogeneous operand: [h | one-hot(prg) | 1] -----------------------
    col = lax.broadcasted_iota(jnp.int32, (bt, P3_ROWS), 1)
    hot = jnp.where(jnp.logical_or(col == prg + EMB_ROW, col == B3_ROW), 1.0, 0.0)
    aug = h + hot                                            # (bt, 48)

    # ---- single fused dot: state_ft (lanes 0:16) + embedding (lanes 16:32) -
    # (w3 matmul, embedding one-hot gather and the b3 add in one MXU push;
    #  exact because the padding rows/lanes of the slab are zero.)
    o_ref[...] = jnp.dot(aug, p3, preferred_element_type=jnp.float32)


# ----------------------------------------------------------------------------
# Parameter initialization (deterministic, in-script) + one-time packing
# ----------------------------------------------------------------------------
def init_params(key):
    in_dim = ENV_DIM + ARG_DIM
    ks = jax.random.split(key, 8)
    return dict(
        # encoder: Linear(in,H) -> ReLU -> Linear(H,H) -> ReLU -> Linear(H,S)
        w1=jax.random.normal(ks[0], (in_dim, HIDDEN_DIM), jnp.float32) * 0.1,
        b1=jax.random.normal(ks[1], (1, HIDDEN_DIM), jnp.float32) * 0.01,
        w2=jax.random.normal(ks[2], (HIDDEN_DIM, HIDDEN_DIM), jnp.float32) * 0.1,
        b2=jax.random.normal(ks[3], (1, HIDDEN_DIM), jnp.float32) * 0.01,
        w3=jax.random.normal(ks[4], (HIDDEN_DIM, STATE_DIM), jnp.float32) * 0.1,
        b3=jax.random.normal(ks[5], (1, STATE_DIM), jnp.float32) * 0.01,
        # pro_key: Parameter ~ N(0,1) -- unused in forward, kept for parity.
        pro_key=jax.random.normal(ks[6], (PRO_NUM, CONFIG["PRO_KEY_DIM"]),
                                  jnp.float32),
        # pro_embedder: nn.Embedding(PRO_NUM, PRO_EMBED_DIM) ~ N(0,1)
        pro_embed=jax.random.normal(ks[7], (PRO_NUM, PRO_EMBED_DIM), jnp.float32),
    )


def pack_params(params):
    """One-time pack of every forward-path constant into ONE (120,128) slab.

    Zero padding of the slab is a correctness invariant: the fused
    homogeneous-coordinate dot relies on unused rows/lanes being exactly 0.
    """
    slab = jnp.zeros((SLAB_ROWS, OUT_LANES), jnp.float32)
    # fused layer-3 block: rows 0:48 = [w3 ; embedding table ; b3]
    slab = slab.at[0:HIDDEN_DIM,
                   STATE_LANE:STATE_LANE + STATE_DIM].set(params["w3"])
    slab = slab.at[EMB_ROW:EMB_ROW + PRO_NUM,
                   EMB_LANE:EMB_LANE + PRO_EMBED_DIM].set(params["pro_embed"])
    slab = slab.at[B3_ROW, STATE_LANE:STATE_LANE + STATE_DIM].set(params["b3"][0])
    # layer-1 block (rows keyed by packed-input lane; b1 at the constant-1 lane)
    slab = slab.at[W1_OFF:W1_OFF + ENV_DIM,
                   0:HIDDEN_DIM].set(params["w1"][:ENV_DIM])
    slab = slab.at[W1_OFF + ARG_LANE:W1_OFF + ARG_LANE + ARG_DIM,
                   0:HIDDEN_DIM].set(params["w1"][ENV_DIM:])
    slab = slab.at[W1_OFF + B1_LANE, 0:HIDDEN_DIM].set(params["b1"][0])
    # layer-2 block + b2 row
    slab = slab.at[W2_OFF:W2_OFF + HIDDEN_DIM, 0:HIDDEN_DIM].set(params["w2"])
    slab = slab.at[B2_OFF, 0:HIDDEN_DIM].set(params["b2"][0])
    return dict(slab=slab)


# ----------------------------------------------------------------------------
# Wrapper: one pallas_call (batch grid axis, weights VMEM-resident), then
# cheap slices of the lane-dense output slab.
# ----------------------------------------------------------------------------
def maze_core_forward(packed, env_in, arg_in, prg_in):
    b = env_in.shape[0]
    bt = min(_rup(b, 8), 128)           # batch tile (sublane-aligned)
    b_pad = _rup(b, bt)

    # lane-packed layer-1 LHS: [env | arg | 1], batch padded to the tile
    x = jnp.zeros((b_pad, IN_LANES), jnp.float32)
    x = x.at[:b, 0:ENV_DIM].set(env_in.astype(jnp.float32))
    x = x.at[:b, ARG_LANE:ARG_LANE + ARG_DIM].set(arg_in.astype(jnp.float32))
    x = x.at[:, B1_LANE].set(1.0)

    prg = jnp.zeros((b_pad, 1), jnp.int32)
    prg = prg.at[:b, 0].set(prg_in.astype(jnp.int32))

    out = pl.pallas_call(
        _maze_core_kernel,
        out_shape=jax.ShapeDtypeStruct((b_pad, OUT_LANES), jnp.float32),
        grid=(b_pad // bt,),
        in_specs=[
            pl.BlockSpec((bt, IN_LANES), lambda i: (i, 0)),
            pl.BlockSpec((bt, 1), lambda i: (i, 0)),
            pl.BlockSpec((SLAB_ROWS, OUT_LANES), lambda i: (0, 0)),  # resident
        ],
        out_specs=pl.BlockSpec((bt, OUT_LANES), lambda i: (i, 0)),
        compiler_params=pltpu.CompilerParams(
            dimension_semantics=("parallel",)),
    )(x, prg, packed["slab"])

    state_ft = out[:b, STATE_LANE:STATE_LANE + STATE_DIM]
    pro_id_embed = out[:b, EMB_LANE:EMB_LANE + PRO_EMBED_DIM]
    return state_ft, pro_id_embed
    # TODO(synk): torch.nn.Embedding raises on out-of-range program ids; here an
    # OOB id silently yields a zero/garbage embedding (one-hot gather semantics).


# ----------------------------------------------------------------------------
# Pure-JAX reference for a sanity check
# ----------------------------------------------------------------------------
def maze_core_ref(params, env_in, arg_in, prg_in):
    x = jnp.concatenate((env_in.astype(jnp.float32),
                         arg_in.astype(jnp.float32)), axis=1)
    h = jnp.maximum(x @ params["w1"] + params["b1"], 0.0)
    h = jnp.maximum(h @ params["w2"] + params["b2"], 0.0)
    state_ft = h @ params["w3"] + params["b3"]
    emb = params["pro_embed"][prg_in.astype(jnp.int32)]
    return state_ft, emb


if __name__ == "__main__":
    key = jax.random.PRNGKey(0)
    kp, ke, ka, kg = jax.random.split(key, 4)

    params = init_params(kp)
    packed = pack_params(params)

    env_in = jax.random.normal(ke, (BATCH, ENV_DIM), jnp.float32)
    arg_in = jax.random.normal(ka, (BATCH, ARG_DIM), jnp.float32)
    prg_in = jax.random.randint(kg, (BATCH,), 0, PRO_NUM, jnp.int32)

    fwd = jax.jit(maze_core_forward)
    state_ft, pro_emb = fwd(packed, env_in, arg_in, prg_in)
    jax.block_until_ready((state_ft, pro_emb))

    ref_state, ref_emb = maze_core_ref(params, env_in, arg_in, prg_in)
    assert state_ft.shape == (BATCH, STATE_DIM)
    assert pro_emb.shape == (BATCH, PRO_EMBED_DIM)
    assert jnp.allclose(state_ft, ref_state, atol=1e-5, rtol=1e-5)
    assert jnp.allclose(pro_emb, ref_emb, atol=1e-6, rtol=1e-6)

    print("KERNEL_OK")
</pallas_src>

<mosaic_0001>
module attributes {stable_mosaic.version = 11 : i64} {
  func.func @_maze_core_kernel(%arg0: i32, %arg1: memref<8x32xf32, #tpu.memory_space<vmem>>, %arg2: memref<8x1xi32, #tpu.memory_space<vmem>>, %arg3: memref<120x128xf32, #tpu.memory_space<vmem>>, %arg4: memref<8x128xf32, #tpu.memory_space<vmem>>) attributes {dimension_semantics = [#tpu.dimension_semantics<parallel>], iteration_bounds = array<i64: 1>, scalar_prefetch = 0 : i64, scratch_operands = 0 : i64, tpu.core_type = #tpu.core_type<tc>, window_params = [{transform_indices = @transform_0, window_bounds = array<i64: 8, 32>}, {transform_indices = @transform_1, window_bounds = array<i64: 8, 1>}, {pipeline_mode = #tpu.pipeline_mode<synchronous>, transform_indices = @transform_2, window_bounds = array<i64: 120, 128>}, {transform_indices = @transform_3, window_bounds = array<i64: 8, 128>}]} {
    %c0 = arith.constant 0 : index
    %c0_0 = arith.constant 0 : index
    %0 = vector.load %arg1[%c0, %c0_0] : memref<8x32xf32, #tpu.memory_space<vmem>>, vector<8x32xf32>
    %c0_1 = arith.constant 0 : index
    %c0_2 = arith.constant 0 : index
    %1 = vector.load %arg2[%c0_1, %c0_2] : memref<8x1xi32, #tpu.memory_space<vmem>>, vector<8x1xi32>
    %c48 = arith.constant 48 : index
    %c0_3 = arith.constant 0 : index
    %2 = vector.load %arg3[%c48, %c0_3] : memref<120x128xf32, #tpu.memory_space<vmem>>, vector<32x32xf32>
    %c80 = arith.constant 80 : index
    %c0_4 = arith.constant 0 : index
    %3 = vector.load %arg3[%c80, %c0_4] : memref<120x128xf32, #tpu.memory_space<vmem>>, vector<32x48xf32>
    %c112 = arith.constant 112 : index
    %c0_5 = arith.constant 0 : index
    %4 = vector.load %arg3[%c112, %c0_5] : memref<120x128xf32, #tpu.memory_space<vmem>>, vector<1x48xf32>
    %c0_6 = arith.constant 0 : index
    %c0_7 = arith.constant 0 : index
    %5 = vector.load %arg3[%c0_6, %c0_7] : memref<120x128xf32, #tpu.memory_space<vmem>>, vector<48x128xf32>
    %cst = arith.constant dense<0.000000e+00> : vector<8x32xf32>
    %6 = tpu.matmul %0, %2, %cst {dimension_numbers = #tpu.dot_dimension_numbers<[1], [0], [0], [1], [0, 0, 1, 1], [], []>} : vector<8x32xf32>, vector<32x32xf32>, vector<8x32xf32> -> vector<8x32xf32>
    %cst_8 = arith.constant 0.000000e+00 : f32
    %7 = vector.broadcast %cst_8 : f32 to vector<8x32xf32>
    %8 = arith.maximumf %6, %7 : vector<8x32xf32>
    %cst_9 = arith.constant dense<0.000000e+00> : vector<8x48xf32>
    %9 = tpu.matmul %8, %3, %cst_9 {dimension_numbers = #tpu.dot_dimension_numbers<[1], [0], [0], [1], [0, 0, 1, 1], [], []>} : vector<8x32xf32>, vector<32x48xf32>, vector<8x48xf32> -> vector<8x48xf32>
    %10 = vector.broadcast %4 : vector<1x48xf32> to vector<8x48xf32>
    %11 = arith.addf %9, %10 : vector<8x48xf32>
    %cst_10 = arith.constant 0.000000e+00 : f32
    %12 = vector.broadcast %cst_10 : f32 to vector<8x48xf32>
    %13 = arith.maximumf %11, %12 : vector<8x48xf32>
    %14 = tpu.iota {dimensions = array<i32: 1>} : vector<8x48xi32>
    %c32_i32 = arith.constant 32 : i32
    %15 = vector.broadcast %c32_i32 : i32 to vector<8x1xi32>
    %16 = arith.addi %1, %15 : vector<8x1xi32>
    %17 = vector.broadcast %16 : vector<8x1xi32> to vector<8x48xi32>
    %18 = arith.cmpi eq, %14, %17 : vector<8x48xi32>
    %c40_i32 = arith.constant 40 : i32
    %19 = vector.broadcast %c40_i32 : i32 to vector<8x48xi32>
    %20 = arith.cmpi eq, %14, %19 : vector<8x48xi32>
    %21 = arith.ori %18, %20 : vector<8x48xi1>
    %cst_11 = arith.constant 1.000000e+00 : f32
    %cst_12 = arith.constant 0.000000e+00 : f32
    %22 = vector.broadcast %cst_11 : f32 to vector<8x48xf32>
    %23 = vector.broadcast %cst_12 : f32 to vector<8x48xf32>
    %24 = arith.select %21, %22, %23 : vector<8x48xi1>, vector<8x48xf32>
    %25 = arith.addf %13, %24 : vector<8x48xf32>
    %cst_13 = arith.constant dense<0.000000e+00> : vector<8x128xf32>
    %26 = tpu.matmul %25, %5, %cst_13 {dimension_numbers = #tpu.dot_dimension_numbers<[1], [0], [0], [1], [0, 0, 1, 1], [], []>} : vector<8x48xf32>, vector<48x128xf32>, vector<8x128xf32> -> vector<8x128xf32>
    %c0_14 = arith.constant 0 : index
    %c0_15 = arith.constant 0 : index
    %27 = vector.load %arg4[%c0_14, %c0_15] : memref<8x128xf32, #tpu.memory_space<vmem>>, vector<8x128xf32>
    tpu.vector_store %arg4[%c0_14, %c0_15], %26 {strides = array<i32>} : memref<8x128xf32, #tpu.memory_space<vmem>>, vector<8x128xf32>,
    return
  }
  func.func @transform_0(%arg0: i32) -> (i32, i32) {
    %c0_i32 = arith.constant 0 : i32
    %c0_i32_0 = arith.constant 0 : i32
    return %arg0, %c0_i32 : i32, i32
  }
  func.func @transform_1(%arg0: i32) -> (i32, i32) {
    %c0_i32 = arith.constant 0 : i32
    %c0_i32_0 = arith.constant 0 : i32
    return %arg0, %c0_i32 : i32, i32
  }
  func.func @transform_2(%arg0: i32) -> (i32, i32) {
    %c0_i32 = arith.constant 0 : i32
    %c0_i32_0 = arith.constant 0 : i32
    %c0_i32_1 = arith.constant 0 : i32
    return %c0_i32, %c0_i32_0 : i32, i32
  }
  func.func @transform_3(%arg0: i32) -> (i32, i32) {
    %c0_i32 = arith.constant 0 : i32
    %c0_i32_0 = arith.constant 0 : i32
    return %arg0, %c0_i32 : i32, i32
  }
}

</mosaic_0001>

<bundles_post_ra>
// kernel: maze_core_forward.1
= control target key start
LH: loop header
LB: loop body
LE: loop exit
PB: predicated region body
PF: predicated region fallthrough
CT: control target
= control target key end

     0   :  { %8 = vsyncpa [#allocation3], 0  ;;  %s400_s12 = smov [#allocation2]   ;;  %s453_s0 = inlined_call_operand.vmem [shape: f32[8,32], index: 0, kind: input, shape index: {}]   ;;  %s454_s1 = inlined_call_operand.vmem [shape: s32[8,1], index: 1, kind: input, shape index: {}]   ;;  %s455_s2 = inlined_call_operand.hbm [shape: f32[120,128], index: 2, kind: input, shape index: {}]   ;;  %s456_s3 = inlined_call_operand.vmem [shape: f32[8,128], index: 3, kind: output, shape index: {}]  }
   0x1   :  { %s18_s13 = sshll.u32 %s400_s12, 4  ;;  %s376_s16 = scalar_lea.hbm %s455_s2, 1920  ;;  %s19_s13 = int_to_ptr.vmem [resolvable:$true] %s18_s13 }
   0x2   :  { %p377_p0 = scmp.ne.s32.totalorder %s455_s2, %s376_s16  ;;  %p380_p1 = scmp.lt.u32.totalorder %s376_s16, %s455_s2 }
   0x4   :  { %p382_p2 = pnand %p380_p1, %p377_p0 }
   0x6   :  { %385 = shalt.err (!%p382_p2)
}
   0x7   :  { %s386_s21 = scalar_lea.vmem %s19_s13, 1920  ;;  %p391_p4 = scmp.lt.s32.totalorder %s19_s13, %s19_s13 }
   0x8   :  { %p387_p3 = scmp.ne.s32.totalorder %s19_s13, %s386_s21  ;;  %p392_p5 = scmp.lt.s32.totalorder %s386_s21, %s386_s21 }
   0xa   :  { %p393_p6 = por %p392_p5, %p391_p4 }
   0xc   :  { %p394_p7 = pnand %p393_p6, %p387_p3 }
   0xe   :  { %397 = shalt.err (!%p394_p7)
}
   0xf   :  { %s401_s22 = smov 128   ;;  %s402_s23 = smov 8  }
  0x10   :  { %24 = dma.hbm_to_vmem [thread:$0]  %s455_s2, 1920, %s19_s13, [#allocation3], %s401_s22, %s401_s22, %s402_s23  }
  0x11   :  { %398 = dma.done.wait [#allocation3], 1920  }
  0x12   :  { %399 = vsyncadd [#allocation3], 4294965376  ;;  %v403_v0 = vmov 0.0|0.0   ;;  %vm404_vm0 = vmmov 0   ;;  %v405_v1 = vmov 0.0   ;;  %v30_v2 = vld [vmem:[#allocation2 + $0x30] sm:$0xff]  ;;  %v198_v30 = vlaneseq }
  0x13   :  { %347 = vmatprep.subr.bf16.mxu1 %v403_v0  ;;  %318 = vmatprep.mubr.msk.f32.mxu1 %vm404_vm0, %v405_v1  ;;  %v31_v3 = vld [vmem:[#allocation2 + $0x38] sm:$0xff]  ;;  %v32_v4 = vld [vmem:[#allocation2 + $0x40] sm:$0xff]  ;;  %v33_v6 = vld [vmem:[#allocation2 + $0x48] sm:$0xff]  ;;  %vm45_vm1 = vcmask 261120   ;;  %v406_v18 = vmov 0   ;;  %vm209_vm5 = vcmask 392192  }
  0x14   :  { %359 = vmatprep.subr.bf16.mxu0 %v403_v0  ;;  %344 = vmatprep.mubr.msk.f32.mxu0 %vm404_vm0, %v405_v1  ;;  %v348_v5 = vpack.c.bf16 %v31_v3, %v30_v2  ;;  %v351_v7 = vpack.c.bf16 %v33_v6, %v32_v4  ;;  %v34_v8 = vld [vmem:[#allocation2 + $0x50] sm:$0xff]  ;;  %v35_v9 = vld [vmem:[#allocation2 + $0x58] sm:$0xff]  ;;  %v28_v10 = vld [vmem:[%s453_s0] sm:$0xff]  ;;  %v199_v31 = vand.u32 127, %v198_v30 }
  0x15   :  { %v354_v11 = vpack.c.bf16 %v35_v9, %v34_v8  ;;  %v36_v12 = vld [vmem:[#allocation2 + $0x60] sm:$0xff]  ;;  %v37_v13 = vld [vmem:[#allocation2 + $0x68] sm:$0xff]  ;;  %375 = vset.pattern.permute.xlu0 %v406_v18  ;;  %v41_v24 = vld [vmem:[#allocation2 + $0x10] sm:$0xff] }
  0x16   :  { %349 = vmatpush3.bf16.msra.mxu1 %v348_v5  ;;  %v357_v14 = vpack.c.bf16 %v37_v13, %v36_v12  ;;  %v29_v15 = vld [vmem:[%s454_s1] sm:$0xff]  ;;  %v40_v17 = vld [vmem:[#allocation2 + $0x8] sm:$0xff]  ;;  %v42_v25 = vld [vmem:[#allocation2 + $0x18] sm:$0xff]  ;;  %vm205_vm2 = vcmp.eq.s32.totalorder %v199_v31, 40 }
  0x17   :  { %350 = vmatprep.subr.bf16.mxu1 %v403_v0  ;;  %v39_v16 = vld [vmem:[#allocation2] sm:$0xff]  ;;  %v200_v19 = vadd.s32 32, %v29_v15  ;;  %v363_v26 = vpack.c.bf16 %v42_v25, %v41_v24  ;;  %v44_v28 = vld [vmem:[#allocation2 + $0x28] sm:$0xff]  ;;  %v290_v33 = vld [vmem:[#allocation2 + $0x70] ss:$0 sm:$0xff] }
  0x18   :  { %v360_v20 = vpack.c.bf16 %v40_v17, %v39_v16  ;;  %v43_v27 = vld [vmem:[#allocation2 + $0x20] sm:$0xff] }
  0x19   :  { %202 = vperm.xlu0 %375, %v200_v19   ;;  %v366_v29 = vpack.c.bf16 %v44_v28, %v43_v27 }
  0x1a   :  { %352 = vmatpush3.bf16.msra.mxu1 %v351_v7  ;;  %361 = vmatpush3.bf16.msra.mxu0 %v360_v20 }
  0x1b   :  { %353 = vmatprep.subr.bf16.mxu1 %v403_v0  ;;  %362 = vmatprep.subr.bf16.mxu0 %v403_v0 }
  0x1d   :  { %319 = vmatmul.mubr.msk.f32.vlgmr.msra.gmra.mrb[0].mxu1 %vm45_vm1, %v28_v10 }
  0x1e   :  { %355 = vmatpush3.bf16.msra.mxu1 %v354_v11  ;;  %329 = vmatprep.mubr.msk.f32.mxu1 %vm404_vm0, %v405_v1 }
  0x1f   :  { %356 = vmatprep.subr.bf16.mxu1 %v403_v0  ;;  %364 = vmatpush3.bf16.msra.mxu0 %v363_v26 }
  0x20   :  { %365 = vmatprep.subr.bf16.mxu0 %v403_v0 }
  0x22   :  { %358 = vmatpush3.bf16.msra.mxu1 %v357_v14 }
  0x23   :  { %367 = vmatpush3.bf16.msra.mxu0 %v366_v29 }
  0x98   :  { %v203_v32 = vpop.permute.xlu0 %202 }
  0x99   :  { %vm204_vm3 = vcmp.eq.s32.totalorder %v199_v31, %v203_v32 }
  0x9a   :  { %vm206_vm4 = vmor %vm204_vm3, %vm205_vm2 }
  0x9b   :  { %v207_v37 = vsel %vm206_vm4, 1.0, %v405_v1 }
  0xf0   :  { %v115_v21 = vpop.f32.mrb[0].mxu1 }
  0xf1   :  { %v119_v22 = vmax.f32 %v115_v21, 0.0  ;;  %v320_v23 = vpop.f32.mrb[1].mxu1 }
  0xf3   :  { %330 = vmatmul.mubr.msk.f32.vlgmr.msra.gmra.mrb[2].mxu1 %vm45_vm1, %v119_v22 }
 0x1c6   :  { %v193_v34 = vpop.f32.mrb[2].mxu1 }
 0x1c7   :  { %v194_v35 = vadd.f32 %v290_v33, %v193_v34  ;;  %v331_v36 = vpop.f32.mrb[3].mxu1 }
 0x1c9   :  { %v197_v38 = vmax.f32 %v194_v35, 0.0 }
 0x1cb   :  { %v208_v39 = vadd.f32 %v207_v37, %v197_v38 }
 0x1cd   :  { %345 = vmatmul.mubr.msk.f32.vlgmr.msra.gmra.mrb[0].mxu0 %vm209_vm5, %v208_v39 }
 0x2a0   :  { %v279_v40 = vpop.f32.mrb[0].mxu0 }
 0x2a1   :  { %283 = vst [vmem:[%s456_s3] sm:$0xff] %v279_v40  ;;  %v346_v41 = vpop.f32.mrb[1].mxu0 }
 0x2a2   :  { %288 = vsyncpa [#allocation3], 1 }

</bundles_post_ra>
